<compile_context>
chip_gen: v7x
topology: tpu7x:2x2x1
jax: 0.10.0
libtpu: 0.0.40
codegen_flags: <defaults>
</compile_context>

<pallas_src>
import jax
import jax.numpy as jnp
from jax.experimental import pallas as pl
from jax.experimental.pallas import tpu as pltpu


# ----------------------------------------------------------------------------
# Kernel: one matmul + bias add per (rows, features) tile.  Used by both the
# lane-dense packed path and the general fallback path.
# ----------------------------------------------------------------------------
def _fused_linear_kernel(x_ref, w_ref, b_ref, o_ref):
    # x_ref: (TM, K) f32, w_ref: (K, N) f32 (resident), b_ref: (1, N) f32.
    y = jnp.dot(x_ref[...], w_ref[...], preferred_element_type=jnp.float32)
    o_ref[...] = (y + b_ref[...]).astype(o_ref.dtype)


# ----------------------------------------------------------------------------
# Wrapper helpers
# ----------------------------------------------------------------------------
def fuse_params(w1, b1, w2, b2):
    """Exact algebraic fusion of the two affine layers (hoist out of the hot
    path / compute once at init): (x@w1+b1)@w2+b2 = x@(w1@w2) + (b1@w2+b2)."""
    w_eff = jnp.dot(w1, w2, preferred_element_type=jnp.float32)          # (8, C)
    b_eff = (jnp.dot(b1[None, :], w2, preferred_element_type=jnp.float32)
             + b2[None, :])                                              # (1, C)
    return w_eff, b_eff


_PACK = 16  # rows packed per lane-dense row: 16 rows * 8 features = 128 lanes


def _pick_tm(n_rows, cap, mult=8):
    """Row-tile size: multiple of `mult` (f32 sublane packing), capped by `cap`
    (VMEM budget), and — when there are enough rows — at least 2 grid steps so
    the 'parallel' batch axis can shard across both TensorCores on v7x."""
    if n_rows <= mult:
        return n_rows                                 # one block, full extent
    tm = min(cap, max(mult, -(-n_rows // 2)))         # aim for >= 2 steps
    return max(mult, (tm // mult) * mult)


def net_forward(x, w1, b1, w2, b2, *, out_dtype=jnp.float32):
    """x: (B, 8); w1: (8, 4); b1: (4,); w2: (4, C); b2: (C,) -> (B, C)."""
    B, K = x.shape
    C = w2.shape[1]
    w_eff, b_eff = fuse_params(w1, b1, w2, b2)

    compiler_params = pltpu.CompilerParams(
        dimension_semantics=("parallel",),  # batch tiles independent
    )

    if B >= _PACK and B % _PACK == 0 and K * _PACK == 128:
        # ---- Lane-dense packed path --------------------------------------
        # (B, 8) -> (B/16, 128) is a free row-major reshape.  Block-diagonal
        # weight kron(I_16, w_eff): packed row r = rows 16r..16r+15, and the
        # (B/16, 16*C) output reshapes back to (B, C) for free.
        Bp = B // _PACK
        Kp = _PACK * K            # 128
        Np = _PACK * C            # 160 for C=10
        x_p = x.reshape(Bp, Kp)
        w_p = jnp.kron(jnp.eye(_PACK, dtype=w_eff.dtype), w_eff)        # (128, 16C)
        b_p = jnp.tile(b_eff, (1, _PACK))                               # (1, 16C)

        # VMEM budget: per packed row ~(512 + 640) B per buffer, double
        # buffered -> tm=4096 packed rows ~= 9 MiB, safe under every chip's
        # default scoped VMEM (v5e 16 MiB, v6e/v7x 32 MiB).
        tm = _pick_tm(Bp, cap=4096)
        grid = (pl.cdiv(Bp, tm),)

        out_p = pl.pallas_call(
            _fused_linear_kernel,
            out_shape=jax.ShapeDtypeStruct((Bp, Np), out_dtype),
            grid_spec=pl.GridSpec(
                grid=grid,
                in_specs=[
                    pl.BlockSpec((tm, Kp), lambda i: (i, 0)),   # x, streamed
                    pl.BlockSpec((Kp, Np), lambda i: (0, 0)),   # weight, resident
                    pl.BlockSpec((1, Np), lambda i: (0, 0)),    # bias, resident
                ],
                out_specs=pl.BlockSpec((tm, Np), lambda i: (i, 0)),
            ),
            compiler_params=compiler_params,
        )(x_p, w_p, b_p)
        return out_p.reshape(B, C)

    # ---- General fallback (ragged / arbitrary batch) ---------------------
    # No pad, no output slice: grid = cdiv(B, tm); Pallas masks the ragged
    # last block.  Lane-sparse (K=8, C=10 < 128 lanes) but still correct.
    # Cap 4096 rows: (tm,8)/(tm,10) blocks are lane-padded to 128 in VMEM
    # (~512 B/row/buffer), double-buffered ~= 8 MiB.
    tm = _pick_tm(B, cap=4096)
    grid = (pl.cdiv(B, tm),)

    out = pl.pallas_call(
        _fused_linear_kernel,
        out_shape=jax.ShapeDtypeStruct((B, C), out_dtype),
        grid_spec=pl.GridSpec(
            grid=grid,
            in_specs=[
                pl.BlockSpec((tm, K), lambda i: (i, 0)),
                pl.BlockSpec((K, C), lambda i: (0, 0)),
                pl.BlockSpec((1, C), lambda i: (0, 0)),
            ],
            out_specs=pl.BlockSpec((tm, C), lambda i: (i, 0)),
        ),
        compiler_params=compiler_params,
    )(x, w_eff, b_eff)
    return out


def init_params(key, num_class=10):
    """Deterministic init mimicking PyTorch nn.Linear default (U(-1/sqrt(fan_in), +))."""
    k1, k2, k3, k4 = jax.random.split(key, 4)
    bound1 = 1.0 / jnp.sqrt(8.0)
    bound2 = 1.0 / jnp.sqrt(4.0)
    # Stored pre-transposed: [in, out]
    w1 = jax.random.uniform(k1, (8, 4), jnp.float32, -bound1, bound1)
    b1 = jax.random.uniform(k2, (4,), jnp.float32, -bound1, bound1)
    w2 = jax.random.uniform(k3, (4, num_class), jnp.float32, -bound2, bound2)
    b2 = jax.random.uniform(k4, (num_class,), jnp.float32, -bound2, bound2)
    return w1, b1, w2, b2


if __name__ == "__main__":
    key = jax.random.PRNGKey(0)
    k_x, k_p = jax.random.split(key)

    num_class = 10
    w1, b1, w2, b2 = init_params(k_p, num_class)

    # --- Packed lane-dense path (batch multiple of 16) ---
    batch = 256
    x = jax.random.normal(k_x, (batch, 8), jnp.float32)
    ref = (x @ w1 + b1) @ w2 + b2
    out = jax.block_until_ready(net_forward(x, w1, b1, w2, b2))
    assert out.shape == (batch, num_class)
    assert jnp.allclose(out, ref, atol=1e-4, rtol=1e-4)

    # --- General fallback path (ragged batch, ragged last grid block) ---
    batch2 = 37
    x2 = jax.random.normal(k_x, (batch2, 8), jnp.float32)
    ref2 = (x2 @ w1 + b1) @ w2 + b2
    out2 = jax.block_until_ready(net_forward(x2, w1, b1, w2, b2))
    assert out2.shape == (batch2, num_class)
    assert jnp.allclose(out2, ref2, atol=1e-4, rtol=1e-4)

    print("KERNEL_OK")
</pallas_src>

<mosaic_0001>
module attributes {stable_mosaic.version = 11 : i64} {
  func.func @_fused_linear_kernel(%arg0: i32, %arg1: memref<8x128xf32, #tpu.memory_space<vmem>>, %arg2: memref<128x160xf32, #tpu.memory_space<vmem>>, %arg3: memref<1x160xf32, #tpu.memory_space<vmem>>, %arg4: memref<8x160xf32, #tpu.memory_space<vmem>>) attributes {dimension_semantics = [#tpu.dimension_semantics<parallel>], iteration_bounds = array<i64: 2>, scalar_prefetch = 0 : i64, scratch_operands = 0 : i64, tpu.core_type = #tpu.core_type<tc>, window_params = [{transform_indices = @transform_0, window_bounds = array<i64: 8, 128>}, {pipeline_mode = #tpu.pipeline_mode<synchronous>, transform_indices = @transform_1, window_bounds = array<i64: 128, 160>}, {pipeline_mode = #tpu.pipeline_mode<synchronous>, transform_indices = @transform_2, window_bounds = array<i64: 1, 160>}, {transform_indices = @transform_3, window_bounds = array<i64: 8, 160>}]} {
    %c0 = arith.constant 0 : index
    %c0_0 = arith.constant 0 : index
    %0 = vector.load %arg1[%c0, %c0_0] : memref<8x128xf32, #tpu.memory_space<vmem>>, vector<8x128xf32>
    %c0_1 = arith.constant 0 : index
    %c0_2 = arith.constant 0 : index
    %1 = vector.load %arg2[%c0_1, %c0_2] : memref<128x160xf32, #tpu.memory_space<vmem>>, vector<128x160xf32>
    %cst = arith.constant dense<0.000000e+00> : vector<8x160xf32>
    %2 = tpu.matmul %0, %1, %cst {dimension_numbers = #tpu.dot_dimension_numbers<[1], [0], [0], [1], [0, 0, 1, 1], [], []>} : vector<8x128xf32>, vector<128x160xf32>, vector<8x160xf32> -> vector<8x160xf32>
    %c0_3 = arith.constant 0 : index
    %c0_4 = arith.constant 0 : index
    %3 = vector.load %arg3[%c0_3, %c0_4] : memref<1x160xf32, #tpu.memory_space<vmem>>, vector<1x160xf32>
    %4 = vector.broadcast %3 : vector<1x160xf32> to vector<8x160xf32>
    %5 = arith.addf %2, %4 : vector<8x160xf32>
    %c0_5 = arith.constant 0 : index
    %c0_6 = arith.constant 0 : index
    %6 = vector.load %arg4[%c0_5, %c0_6] : memref<8x160xf32, #tpu.memory_space<vmem>>, vector<8x160xf32>
    tpu.vector_store %arg4[%c0_5, %c0_6], %5 {strides = array<i32>} : memref<8x160xf32, #tpu.memory_space<vmem>>, vector<8x160xf32>,
    return
  }
  func.func @transform_0(%arg0: i32) -> (i32, i32) {
    %c0_i32 = arith.constant 0 : i32
    %c0_i32_0 = arith.constant 0 : i32
    return %arg0, %c0_i32 : i32, i32
  }
  func.func @transform_1(%arg0: i32) -> (i32, i32) {
    %c0_i32 = arith.constant 0 : i32
    %c0_i32_0 = arith.constant 0 : i32
    %c0_i32_1 = arith.constant 0 : i32
    return %c0_i32, %c0_i32_0 : i32, i32
  }
  func.func @transform_2(%arg0: i32) -> (i32, i32) {
    %c0_i32 = arith.constant 0 : i32
    %c0_i32_0 = arith.constant 0 : i32
    %c0_i32_1 = arith.constant 0 : i32
    return %c0_i32, %c0_i32_0 : i32, i32
  }
  func.func @transform_3(%arg0: i32) -> (i32, i32) {
    %c0_i32 = arith.constant 0 : i32
    %c0_i32_0 = arith.constant 0 : i32
    return %arg0, %c0_i32 : i32, i32
  }
}

</mosaic_0001>

<bundles_post_ra>
// kernel: tpu_custom_call.1
= control target key start
LH: loop header
LB: loop body
LE: loop exit
PB: predicated region body
PF: predicated region fallthrough
CT: control target
= control target key end

     0   :  { %8 = vsyncpa [#allocation3], 0  ;;  %s728_s0 = inlined_call_operand.vmem [shape: f32[16,128], index: 0, kind: input, shape index: {}]   ;;  %s729_s1 = inlined_call_operand.vmem [shape: f32[128,160], index: 1, kind: input, shape index: {}]   ;;  %s730_s2 = inlined_call_operand.vmem [shape: f32[1,160], index: 2, kind: input, shape index: {}]   ;;  %s731_s3 = inlined_call_operand.hbm [shape: f32[16,160], index: 3, kind: output, shape index: {}]  }
   0x1   :  { %10 = vsyncpa [#allocation3 + $0x1], 0  ;;  %s529_s12 = smov 0   ;;  %s531_s13 = smov 0  }
   0x2   :  { %s533_s14 = smov 0   ;;  %s535_s15 = smov 0  }
   0x3 LB: > { %s550_s16 = sadd.s32 4294967295, %s505_s15   ;;  %s359_s17 = sadd.s32 4294967294, %s505_s15   ;;  %s505_s15 = sphi %s535_s15, %s737_s15   ;;  %s501_s14 = sphi %s533_s14, %s736_s14   ;;  %s497_s13 = sphi %s531_s13, %s735_s13   ;;  %s493_s12 = sphi %s529_s12, %s734_s12  }
   0x4   : > { %s554_s18 = sadd.s32 1, %s505_s15   ;;  %s91_s19 = sadd.s32 1, %s501_s14 }
   0x5   : > { %s88_s20 = ssub.s32 %s505_s15, %s554_s18  ;;  %p101_p0 = scmp.ne.s32.totalorder %s501_s14, %s497_s13 }
   0x6   : > { %p89_p1 = scmp.eq.s32.totalorder %s88_s20, 0  ;;  %p102_p2 = scmp.eq.s32.totalorder %s550_s16, 1 }
   0x7   : > { %p107_p3 = scmp.ne.s32.totalorder %s497_s13, %s493_s12  ;;  %p108_p4 = scmp.eq.s32.totalorder %s359_s17, 1 }
   0x8   : > { %s565_s21 = scalar_select %p89_p1, %s501_s14, %s91_s19  }
   0x9   : > { %p567_p5 = por %p102_p2, %p101_p0  ;;  %p571_p6 = por %p108_p4, %p107_p3 }
   0xa   : > { %p362_p7 = scmp.ge.s32.totalorder %s505_s15, 1  ;;  %p139_p8 = scmp.lt.s32.totalorder %s505_s15, 3 }
   0xc   : > { %p140_p9 = pnand %p362_p7, %p139_p8 }
   0xd   : > { %v168_v0 = vld [vmem:[%s729_s1 + $0x8] sm:$0xff] (!%p140_p9)  ;;  %v170_v1 = vld [vmem:[%s729_s1 + $0x18] sm:$0xff] (!%p140_p9)  ;;  %v167_v2 = vld [vmem:[%s729_s1] sm:$0xff] (!%p140_p9)  ;;  %v507_v7 = vmov (!%p140_p9), 0.0   ;;  %p162_p10 = scmp.lt.s32.totalorder (!%p140_p9), %s550_s16, 1  ;;  %v201_v50 = vlaneseq (!%p140_p9)  ;;  %s159_s17 = sand.u32 (!%p140_p9), 1, %s497_s13  }
   0xe   : > { %143 = sbr.rel (%p140_p9) target bundleno = 277 (0x115), region = 32  ;;  %v371_v3 = vpack.c.bf16 (!%p140_p9), %v170_v1, %v168_v0  ;;  %v169_v4 = vld [vmem:[%s729_s1 + $0x10] sm:$0xff] (!%p140_p9)  ;;  %v172_v5 = vld [vmem:[%s729_s1 + $0x28] sm:$0xff] (!%p140_p9)  ;;  %v174_v6 = vld [vmem:[%s729_s1 + $0x38] sm:$0xff] (!%p140_p9)  ;;  %275 = vmatprep.mubr.f32.mxu0 (!%p140_p9), %v507_v7  ;;  %s363_s19 = sshll.u32 (!%p140_p9), %s159_s17, 4  ;;  %vm283_vm0 = vcmask (!%p140_p9), 261120  }
   0xf   : > { %v373_v8 = vpack.c.bf16 (!%p140_p9), %v169_v4, %v167_v2  ;;  %v375_v9 = vpack.c.bf16 (!%p140_p9), %v174_v6, %v172_v5  ;;  %v171_v10 = vld [vmem:[%s729_s1 + $0x20] sm:$0xff] (!%p140_p9)  ;;  %v173_v11 = vld [vmem:[%s729_s1 + $0x30] sm:$0xff] (!%p140_p9)  ;;  %v176_v12 = vld [vmem:[%s729_s1 + $0x48] sm:$0xff] (!%p140_p9)  ;;  %v202_v51 = vshrl.u32 (!%p140_p9), %v201_v50, 7  ;;  %s370_s25 = sshll.u32 (!%p140_p9), %s550_s16, 8  ;;  %s161_s26 = scalar_lea.vmem (!%p140_p9), [#allocation2], %s363_s19 }
  0x10   : > { %372 = vmatprep.subr.bf16.mxu0 (!%p140_p9), %v371_v3  ;;  %v178_v13 = vld [vmem:[%s729_s1 + $0x58] sm:$0xff] (!%p140_p9)  ;;  %v377_v14 = vpack.c.bf16 (!%p140_p9), %v173_v11, %v171_v10  ;;  %v175_v16 = vld [vmem:[%s729_s1 + $0x40] sm:$0xff] (!%p140_p9)  ;;  %v177_v17 = vld [vmem:[%s729_s1 + $0x50] sm:$0xff] (!%p140_p9)  ;;  %s300_s27 = sshll.u32 (!%p140_p9), %s161_s26, 4  ;;  %s508_s5 = smov (!%p140_p9), [#allocation2]   ;;  %s688_s27 = int_to_ptr.vmem [resolvable:$true] %s300_s27 }
  0x11   : > { %374 = vmatpush1.bf16.msra.mxu0 (!%p140_p9), %v373_v8  ;;  %v379_v15 = vpack.c.bf16 (!%p140_p9), %v178_v13, %v176_v12  ;;  %v180_v18 = vld [vmem:[%s729_s1 + $0x68] sm:$0xff] (!%p140_p9)  ;;  %v182_v19 = vld [vmem:[%s729_s1 + $0x78] sm:$0xff] (!%p140_p9)  ;;  %v381_v20 = vpack.c.bf16 (!%p140_p9), %v177_v17, %v175_v16  ;;  %v179_v22 = vld [vmem:[%s729_s1 + $0x60] sm:$0xff] (!%p140_p9)  ;;  %v203_v52 = vsub.s32 (!%p140_p9), 0, %v202_v51  ;;  %v207_v54 = vsub.s32 (!%p140_p9), 1, %v202_v51  ;;  %s443_s4 = scalar_lea.vmem (!%p140_p9), %s688_s27, 256 }
  0x12   : > { %376 = vmatprep.subr.bf16.mxu0 (!%p140_p9), %v375_v9  ;;  %v383_v21 = vpack.c.bf16 (!%p140_p9), %v182_v19, %v180_v18  ;;  %v181_v23 = vld [vmem:[%s729_s1 + $0x70] sm:$0xff] (!%p140_p9)  ;;  %v184_v24 = vld [vmem:[%s729_s1 + $0x88] sm:$0xff] (!%p140_p9)  ;;  %v186_v25 = vld [vmem:[%s729_s1 + $0x98] sm:$0xff] (!%p140_p9)  ;;  %p444_p11 = scmp.ne.s32.totalorder (!%p140_p9), %s688_s27, %s443_s4  ;;  %s447_s6 = sshll.u32 (!%p140_p9), %s508_s5, 4  ;;  %s448_s6 = int_to_ptr.vmem [resolvable:$false] %s447_s6 }
  0x13   : > { %v385_v26 = vpack.c.bf16 (!%p140_p9), %v181_v23, %v179_v22  ;;  %v387_v27 = vpack.c.bf16 (!%p140_p9), %v186_v25, %v184_v24  ;;  %v183_v28 = vld [vmem:[%s729_s1 + $0x80] sm:$0xff] (!%p140_p9)  ;;  %v185_v29 = vld [vmem:[%s729_s1 + $0x90] sm:$0xff] (!%p140_p9)  ;;  %v188_v30 = vld [vmem:[%s729_s1 + $0xa8] sm:$0xff] (!%p140_p9)  ;;  %s449_s7 = scalar_lea.vmem (!%p140_p9), %s448_s6, 512  ;;  %p450_p0 = scmp.lt.s32.totalorder (!%p140_p9), %s688_s27, %s448_s6 }
  0x14   : > { %v190_v31 = vld [vmem:[%s729_s1 + $0xb8] sm:$0xff] (!%p140_p9)  ;;  %v389_v32 = vpack.c.bf16 (!%p140_p9), %v185_v29, %v183_v28  ;;  %v187_v34 = vld [vmem:[%s729_s1 + $0xa0] sm:$0xff] (!%p140_p9)  ;;  %v189_v35 = vld [vmem:[%s729_s1 + $0xb0] sm:$0xff] (!%p140_p9)  ;;  %p445_p12 = pnand (!%p140_p9), %p444_p11, %p567_p5  ;;  %p451_p1 = scmp.lt.s32.totalorder (!%p140_p9), %s449_s7, %s443_s4 }
  0x15   : > { %378 = vmatpush1.bf16.msra.mxu0 %v377_v14  ;;  %v391_v33 = vpack.c.bf16 %v190_v31, %v188_v30  ;;  %v192_v36 = vld [vmem:[%s729_s1 + $0xc8] sm:$0xff]  ;;  %v194_v37 = vld [vmem:[%s729_s1 + $0xd8] sm:$0xff]  ;;  %v393_v38 = vpack.c.bf16 %v189_v35, %v187_v34  ;;  %v191_v40 = vld [vmem:[%s729_s1 + $0xc0] sm:$0xff]  ;;  %s163_s30 = scalar_select %p162_p10, %s550_s16, 1 }
  0x16   : > { %380 = vmatprep.subr.bf16.mxu0 %v379_v15  ;;  %v395_v39 = vpack.c.bf16 %v194_v37, %v192_v36  ;;  %v193_v41 = vld [vmem:[%s729_s1 + $0xd0] sm:$0xff]  ;;  %v196_v42 = vld [vmem:[%s729_s1 + $0xe8] sm:$0xff]  ;;  %v198_v43 = vld [vmem:[%s729_s1 + $0xf8] sm:$0xff]  ;;  %s286_s16 = scalar_lea.sflag [#allocation3], %s159_s17  ;;  %p446_p13 = pneg %p445_p12 }
  0x17   : > { %v397_v44 = vpack.c.bf16 %v193_v41, %v191_v40  ;;  %v399_v45 = vpack.c.bf16 %v198_v43, %v196_v42  ;;  %v195_v46 = vld [vmem:[%s729_s1 + $0xe0] sm:$0xff]  ;;  %v197_v47 = vld [vmem:[%s729_s1 + $0xf0] sm:$0xff]  ;;  %s364_s8 = sshll.u32 %s163_s30, 3  ;;  %s686_s30 = scalar_lea.hbm %s731_s3, %s370_s25 }
  0x18   : > { %v401_v48 = vpack.c.bf16 %v197_v47, %v195_v46  ;;  %s165_s11 = scalar_lea.vmem %s728_s0, %s364_s8  ;;  %v199_v53 = vld [vmem:[%s730_s2] sm:$0x3]  ;;  %p452_p2 = por %p451_p1, %p450_p0 }
  0x19   : > { %382 = vmatpush1.bf16.msra.mxu0 %v381_v20  ;;  %v166_v49 = vld [vmem:[%s165_s11] sm:$0xff]  ;;  %v204_v55 = vrot.slane %v199_v53, %v203_v52  ;;  %v208_v56 = vrot.slane %v199_v53, %v207_v54 }
  0x1a   : > { %384 = vmatprep.subr.bf16.mxu0 %v383_v21  ;;  %p453_p3 = pnand %p452_p2, %p446_p13 }
  0x1d   : > { %386 = vmatpush1.bf16.msra.mxu0 %v385_v26 }
  0x1e   : > { %388 = vmatprep.subr.bf16.mxu0 %v387_v27 }
  0x21   : > { %390 = vmatpush1.bf16.msra.mxu0 %v389_v32 }
  0x22   : > { %392 = vmatprep.subr.bf16.mxu0 %v391_v33 }
  0x25   : > { %394 = vmatpush1.bf16.msra.mxu0 %v393_v38 }
  0x26   : > { %396 = vmatprep.subr.bf16.mxu0 %v395_v39 }
  0x29   : > { %398 = vmatpush1.bf16.msra.mxu0 %v397_v44 }
  0x2a   : > { %400 = vmatprep.subr.bf16.mxu0 %v399_v45 }
  0x2d   : > { %402 = vmatpush1.bf16.msra.mxu0 %v401_v48 }
  0x30   : > { %276 = vmatmul.mubr.f32.vlgmr.msra.gmra.mrb[0].mxu0 %v166_v49 }
 0x103   : > { %v277_v57 = vpop.f32.mrb[0].mxu0 }
 0x104   : > { %v278_v58 = vadd.f32 %v277_v57, %v204_v55  ;;  %v279_v59 = vpop.f32.mrb[1].mxu0 }
 0x105   : > { %v280_v60 = vadd.f32 %v279_v59, %v208_v56 }
 0x106   : > { %282 = vst [vmem:[%s161_s26] sm:$0xff] %v278_v58 }
 0x107   : > { %284 = vst.msk [vmem:[%s161_s26 + $0x8] sm:$0xff] %vm283_vm0, %v280_v60 }
 0x108   : > { %456 = shalt.err (!%p453_p3)
}
 0x109   : > { %s457_s8 = scalar_lea.hbm %s686_s30, 256  ;;  %s461_s11 = scalar_lea.hbm %s731_s3, 512 }
 0x10a   : > { %p458_p4 = scmp.ne.s32.totalorder %s686_s30, %s457_s8  ;;  %p462_p9 = scmp.lt.u32.totalorder %s686_s30, %s731_s3 }
 0x10b   : > { %p463_p10 = scmp.lt.u32.totalorder %s461_s11, %s457_s8  ;;  %p465_p12 = scmp.lt.u32.totalorder %s457_s8, %s686_s30 }
 0x10c   : > { %p459_p7 = pnand %p458_p4, %p567_p5 }
 0x10d   : > { %p464_p11 = por %p463_p10, %p462_p9 }
 0x10e   : > { %p460_p8 = pneg %p459_p7 }
 0x10f   : > { %p466_p13 = por %p465_p12, %p464_p11 }
 0x111   : > { %p467_p0 = pnand %p466_p13, %p460_p8 }
 0x113   : > { %470 = shalt.err (!%p467_p0)
}
 0x114   : > { %403 = dma.vmem_to_hbm [thread:$0]  (%p567_p5), %s688_s27, 256, %s686_s30, %s286_s16  }
 0x115 PF: > { %p409_p1 = scmp.ge.s32.totalorder %s505_s15, 2  ;;  %s312_s20 = sand.u32 1, %s493_s12  }
 0x116   : > { %s313_s24 = scalar_lea.sflag [#allocation3], %s312_s20 }
 0x117   : > { %p406_p2 = pnand %p409_p1, %p571_p6 }
 0x119   : > { %488 = dma.done.wait (!%p406_p2), %s313_s24, 256  }
 0x11a   : > { %490 = vsyncadd (!%p406_p2), %s313_s24, 4294967040  ;;  %p13_p3 = scmp.ge.s32.totalorder %s554_s18, 4   ;;  %s734_s12 = smov %s497_s13 }
 0x11b   : > { %s735_s13 = smov %s501_s14  ;;  %s736_s14 = smov %s565_s21 }
 0x11c   : > { %s737_s15 = smov %s554_s18  ;;  %15 = sbr.rel (!%p13_p3) target bundleno = 3 (0x3), region = 67 }
 0x123   :  { %318 = vsyncpa [#allocation3], 1 }
 0x124   :  { %320 = vsyncpa [#allocation3 + $0x1], 1 }

</bundles_post_ra>
